<compile_context>
chip_gen: v5e
topology: v5e:2x2
jax: 0.10.0
libtpu: 0.0.40
codegen_flags: <defaults>
</compile_context>

<pallas_src>
import functools

import jax
import jax.numpy as jnp
from jax import lax
from jax.experimental import pallas as pl
from jax.experimental.pallas import tpu as pltpu


def _pick_row_tile(n: int, adaptive: bool) -> int:
    """Largest row tile dividing n that keeps double-buffered tiles small."""
    n_streamed = 2 if adaptive else 1            # number of (tm, N) inputs per step
    budget = 24 * 1024 * 1024                    # fits v7x scoped VMEM with headroom
    for tm in (512, 256, 128, 64, 32, 16, 8):
        if n % tm == 0 and n_streamed * 2 * tm * n * 4 <= budget:
            return tm
    return n                                     # tiny / odd n: single full block


def _make_kernel(mode: str, adaptive: bool, n: int, tm: int):
    """Builds the Pallas kernel body for a given (static) reduction mode."""
    inv_n = 1.0 / float(n)

    def _costs(i, margin_ref, scores_ref, d1_ref, d2_ref, probs_ref):
        s = scores_ref[...].astype(jnp.float32)          # (tm, n) row tile
        d1 = d1_ref[...].astype(jnp.float32)             # (tm, 1) diag slice
        d2 = d2_ref[...].astype(jnp.float32)             # (1, n)  full diag
        mval = margin_ref[0, 0]                          # SMEM scalar margin

        if adaptive:
            p = probs_ref[...].astype(jnp.float32)
            q = 1.0 - p
            p2 = p * p
            sfac = p2 / (p2 + q * q)                     # == 1/(1 + (p/(1-p))^-2)
            m = mval * sfac                              # (tm, n) adaptive margin
        else:
            m = mval                                     # scalar margin

        cost_s = jnp.maximum(m + s - d1, 0.0)            # caption retrieval cost
        cost_im = jnp.maximum(m + s - d2, 0.0)           # image retrieval cost

        # Diagonal mask from small iotas (no full N^2 int32 temporaries).
        row_ids = i * tm + lax.broadcasted_iota(jnp.int32, (tm, 1), 0)
        col_ids = lax.broadcasted_iota(jnp.int32, (1, n), 1)
        eye = row_ids == col_ids                         # (tm, n) via broadcast
        cost_s = jnp.where(eye, 0.0, cost_s)
        cost_im = jnp.where(eye, 0.0, cost_im)
        return cost_s, cost_im

    if mode == "warmup":
        # sum(mean(cost_s,1)) + sum(mean(cost_im,0)) == (sum(cost_s)+sum(cost_im))/N
        def kernel(*refs):
            if adaptive:
                margin_ref, scores_ref, d1_ref, d2_ref, probs_ref, out_ref = refs
            else:
                margin_ref, scores_ref, d1_ref, d2_ref, out_ref = refs
                probs_ref = None
            i = pl.program_id(0)
            cost_s, cost_im = _costs(i, margin_ref, scores_ref, d1_ref, d2_ref,
                                     probs_ref)

            @pl.when(i == 0)
            def _():
                out_ref[...] = jnp.zeros_like(out_ref)

            out_ref[...] = out_ref[...] + jnp.sum(cost_s + cost_im)

            @pl.when(i == pl.num_programs(0) - 1)
            def _():
                out_ref[...] = out_ref[...] * inv_n

        return kernel

    if mode == "max_violation":
        def kernel(*refs):
            if adaptive:
                (margin_ref, scores_ref, d1_ref, d2_ref, probs_ref,
                 out_ref, colmax_ref) = refs
            else:
                (margin_ref, scores_ref, d1_ref, d2_ref,
                 out_ref, colmax_ref) = refs
                probs_ref = None
            i = pl.program_id(0)
            cost_s, cost_im = _costs(i, margin_ref, scores_ref, d1_ref, d2_ref,
                                     probs_ref)

            @pl.when(i == 0)
            def _():
                out_ref[...] = jnp.zeros_like(out_ref)
                colmax_ref[...] = jnp.zeros_like(colmax_ref)   # costs are >= 0

            row_max = jnp.max(cost_s, axis=1, keepdims=True)   # (tm, 1)
            out_ref[...] = out_ref[...] + jnp.sum(row_max)
            colmax_ref[...] = jnp.maximum(
                colmax_ref[...], jnp.max(cost_im, axis=0, keepdims=True))

            @pl.when(i == pl.num_programs(0) - 1)
            def _():
                out_ref[...] = out_ref[...] + jnp.sum(colmax_ref[...])

        return kernel

    # mode == "eval_loss"
    def kernel(*refs):
        if adaptive:
            (margin_ref, scores_ref, d1_ref, d2_ref, probs_ref,
             row_out_ref, col_out_ref) = refs
        else:
            (margin_ref, scores_ref, d1_ref, d2_ref,
             row_out_ref, col_out_ref) = refs
            probs_ref = None
        i = pl.program_id(0)
        cost_s, cost_im = _costs(i, margin_ref, scores_ref, d1_ref, d2_ref,
                                 probs_ref)

        # Per-tile row means go straight to their own output block.
        row_out_ref[...] = jnp.sum(cost_s, axis=1, keepdims=True) * inv_n

        @pl.when(i == 0)
        def _():
            col_out_ref[...] = jnp.zeros_like(col_out_ref)

        col_out_ref[...] = col_out_ref[...] + jnp.sum(cost_im, axis=0,
                                                      keepdims=True)

        @pl.when(i == pl.num_programs(0) - 1)
        def _():
            col_out_ref[...] = col_out_ref[...] * inv_n

    return kernel


@functools.partial(jax.jit, static_argnames=("hard_negative", "soft_margin"))
def contrastive_loss(scores, hard_negative="warmup", margin=0.0,
                     probs=None, soft_margin=None):
    """Pallas-backed equivalent of ContrastiveLoss.forward."""
    n = scores.shape[0]
    assert scores.shape == (n, n)
    if hard_negative not in ("warmup", "max_violation", "eval_loss"):
        raise ValueError("Invalid hard negative type")

    adaptive = (probs is not None) and (soft_margin == "s_adaptive")
    tm = _pick_row_tile(n, adaptive)
    grid = (n // tm,)

    diag = jnp.diagonal(scores).astype(jnp.float32)
    diag_col = diag.reshape(n, 1)
    diag_row = diag.reshape(1, n)
    margin_arr = jnp.asarray(margin, jnp.float32).reshape(1, 1)

    in_specs = [
        pl.BlockSpec(memory_space=pltpu.MemorySpace.SMEM),   # margin scalar
        pl.BlockSpec((tm, n), lambda i: (i, 0)),             # scores row tile
        pl.BlockSpec((tm, 1), lambda i: (i, 0)),             # d1 = diag column slice
        pl.BlockSpec((1, n), lambda i: (0, 0)),              # d2 = full diag (resident)
    ]
    inputs = [margin_arr, scores, diag_col, diag_row]
    if adaptive:
        in_specs.append(pl.BlockSpec((tm, n), lambda i: (i, 0)))
        inputs.append(probs)

    scratch_shapes = []
    if hard_negative == "eval_loss":
        out_shape = (jax.ShapeDtypeStruct((n, 1), jnp.float32),
                     jax.ShapeDtypeStruct((1, n), jnp.float32))
        out_specs = (pl.BlockSpec((tm, 1), lambda i: (i, 0)),
                     pl.BlockSpec((1, n), lambda i: (0, 0)))
    else:
        out_shape = jax.ShapeDtypeStruct((1, 1), jnp.float32)
        out_specs = pl.BlockSpec((1, 1), lambda i: (0, 0))
        if hard_negative == "max_violation":
            scratch_shapes = [pltpu.VMEM((1, n), jnp.float32)]

    n_streamed = 2 if adaptive else 1
    vmem_needed = n_streamed * 2 * tm * n * 4 + 8 * n * 4 + (2 << 20)
    vmem_limit = int(min(max(vmem_needed, 16 * 1024 * 1024), 100 * 1024 * 1024))

    bytes_accessed = (n_streamed * n * n * 4 + 2 * n * 4
                      + (2 * n * 4 if hard_negative == "eval_loss" else 4))
    cost = pl.CostEstimate(
        flops=(10 if adaptive else 6) * n * n,
        transcendentals=0,
        bytes_accessed=bytes_accessed,
    )

    kernel = _make_kernel(hard_negative, adaptive, n, tm)

    out = pl.pallas_call(
        kernel,
        out_shape=out_shape,
        grid=grid,
        in_specs=in_specs,
        out_specs=out_specs,
        scratch_shapes=scratch_shapes,
        compiler_params=pltpu.CompilerParams(
            dimension_semantics=("arbitrary",),   # resident accumulators across tiles
            vmem_limit_bytes=vmem_limit,
        ),
        cost_estimate=cost,
    )(*inputs)

    if hard_negative == "eval_loss":
        row_part, col_part = out
        return row_part.reshape(n) + col_part.reshape(n)
    return out[0, 0]


def _reference(scores, hard_negative, margin=0.0, probs=None, soft_margin=None):
    """Pure-jnp reference mirroring the PyTorch forward (for validation)."""
    n = scores.shape[0]
    diag = jnp.diag(scores).reshape(n, 1)
    d1 = diag
    d2 = diag.T
    if probs is not None and soft_margin == "s_adaptive":
        s = 1.0 / (1.0 + (probs / (1.0 - probs)) ** (-2))
        m = margin * s
    else:
        m = margin
    cost_s = jnp.maximum(m + scores - d1, 0.0)
    cost_im = jnp.maximum(m + scores - d2, 0.0)
    eye = jnp.eye(n, dtype=bool)
    cost_s = jnp.where(eye, 0.0, cost_s)
    cost_im = jnp.where(eye, 0.0, cost_im)
    if hard_negative == "warmup":
        return cost_s.mean(1).sum() + cost_im.mean(0).sum()
    if hard_negative == "max_violation":
        return cost_s.max(1).sum() + cost_im.max(0).sum()
    return cost_s.mean(1) + cost_im.mean(0)


def _check(got, want, atol=1e-4, rtol=1e-4):
    assert jnp.allclose(got, want, atol=atol, rtol=rtol), (got, want)


if __name__ == "__main__":
    key = jax.random.PRNGKey(0)
    k1, k2, k3, k4 = jax.random.split(key, 4)
    margin = 0.2

    # Small batch (single tile path).
    N = 8
    scores = jax.random.normal(k1, (N, N), dtype=jnp.float32)
    probs = jax.nn.sigmoid(jax.random.normal(k2, (N, N), dtype=jnp.float32))

    loss_w = contrastive_loss(scores, "warmup", margin)
    loss_m = contrastive_loss(scores, "max_violation", margin)
    loss_e = contrastive_loss(scores, "eval_loss", margin)
    loss_a = contrastive_loss(scores, "max_violation", margin,
                              probs=probs, soft_margin="s_adaptive")
    jax.block_until_ready((loss_w, loss_m, loss_e, loss_a))

    _check(loss_w, _reference(scores, "warmup", margin))
    _check(loss_m, _reference(scores, "max_violation", margin))
    _check(loss_e, _reference(scores, "eval_loss", margin))
    _check(loss_a, _reference(scores, "max_violation", margin, probs,
                              "s_adaptive"))

    # Larger batch exercising the multi-tile (grid > 1) accumulation path.
    N2 = 1024
    scores2 = jax.random.normal(k3, (N2, N2), dtype=jnp.float32)
    probs2 = jax.nn.sigmoid(jax.random.normal(k4, (N2, N2), dtype=jnp.float32))

    loss2_w = contrastive_loss(scores2, "warmup", margin)
    loss2_m = contrastive_loss(scores2, "max_violation", margin)
    loss2_e = contrastive_loss(scores2, "eval_loss", margin)
    loss2_a = contrastive_loss(scores2, "warmup", margin,
                               probs=probs2, soft_margin="s_adaptive")
    jax.block_until_ready((loss2_w, loss2_m, loss2_e, loss2_a))

    _check(loss2_w, _reference(scores2, "warmup", margin), atol=5e-3, rtol=5e-4)
    _check(loss2_m, _reference(scores2, "max_violation", margin),
           atol=5e-3, rtol=5e-4)
    _check(loss2_e, _reference(scores2, "eval_loss", margin),
           atol=1e-4, rtol=1e-4)
    _check(loss2_a, _reference(scores2, "warmup", margin, probs2, "s_adaptive"),
           atol=5e-3, rtol=5e-4)

    print("KERNEL_OK")
</pallas_src>

<mosaic_0001>
module attributes {stable_mosaic.version = 11 : i64} {
  func.func @kernel(%arg0: i32, %arg1: memref<1x1xf32, #tpu.memory_space<smem>>, %arg2: memref<8x8xf32, #tpu.memory_space<vmem>>, %arg3: memref<8x1xf32, #tpu.memory_space<vmem>>, %arg4: memref<1x8xf32, #tpu.memory_space<vmem>>, %arg5: memref<1x1xf32, #tpu.memory_space<vmem>>) attributes {dimension_semantics = [#tpu.dimension_semantics<arbitrary>], iteration_bounds = array<i64: 1>, scalar_prefetch = 0 : i64, scratch_operands = 0 : i64, tpu.core_type = #tpu.core_type<tc>, window_params = [{transform_indices = @transform_0, window_bounds = array<i64: 1, 1>}, {transform_indices = @transform_1, window_bounds = array<i64: 8, 8>}, {transform_indices = @transform_2, window_bounds = array<i64: 8, 1>}, {pipeline_mode = #tpu.pipeline_mode<synchronous>, transform_indices = @transform_3, window_bounds = array<i64: 1, 8>}, {pipeline_mode = #tpu.pipeline_mode<synchronous>, transform_indices = @transform_4, window_bounds = array<i64: 1, 1>}]} {
    %c0 = arith.constant 0 : index
    %c0_0 = arith.constant 0 : index
    %0 = vector.load %arg2[%c0, %c0_0] : memref<8x8xf32, #tpu.memory_space<vmem>>, vector<8x8xf32>
    %c0_1 = arith.constant 0 : index
    %c0_2 = arith.constant 0 : index
    %1 = vector.load %arg3[%c0_1, %c0_2] : memref<8x1xf32, #tpu.memory_space<vmem>>, vector<8x1xf32>
    %c0_3 = arith.constant 0 : index
    %c0_4 = arith.constant 0 : index
    %2 = vector.load %arg4[%c0_3, %c0_4] : memref<1x8xf32, #tpu.memory_space<vmem>>, vector<1x8xf32>
    %c0_5 = arith.constant 0 : index
    %c0_6 = arith.constant 0 : index
    %3 = memref.load %arg1[%c0_5, %c0_6] : memref<1x1xf32, #tpu.memory_space<smem>>
    %4 = vector.broadcast %3 : f32 to vector<8x8xf32>
    %5 = arith.addf %4, %0 : vector<8x8xf32>
    %6 = vector.broadcast %1 : vector<8x1xf32> to vector<8x8xf32>
    %7 = arith.subf %5, %6 : vector<8x8xf32>
    %cst = arith.constant 0.000000e+00 : f32
    %8 = vector.broadcast %cst : f32 to vector<8x8xf32>
    %9 = arith.maximumf %7, %8 : vector<8x8xf32>
    %10 = vector.broadcast %3 : f32 to vector<8x8xf32>
    %11 = arith.addf %10, %0 : vector<8x8xf32>
    %12 = vector.broadcast %2 : vector<1x8xf32> to vector<8x8xf32>
    %13 = arith.subf %11, %12 : vector<8x8xf32>
    %cst_7 = arith.constant 0.000000e+00 : f32
    %14 = vector.broadcast %cst_7 : f32 to vector<8x8xf32>
    %15 = arith.maximumf %13, %14 : vector<8x8xf32>
    %c8_i32 = arith.constant 8 : i32
    %16 = arith.muli %arg0, %c8_i32 : i32
    %17 = tpu.iota {dimensions = array<i32: 0>} : vector<8x1xi32>
    %18 = vector.broadcast %16 : i32 to vector<8x1xi32>
    %19 = arith.addi %18, %17 : vector<8x1xi32>
    %20 = tpu.iota {dimensions = array<i32: 1>} : vector<1x8xi32>
    %21 = vector.broadcast %19 : vector<8x1xi32> to vector<8x8xi32>
    %22 = vector.broadcast %20 : vector<1x8xi32> to vector<8x8xi32>
    %23 = arith.cmpi eq, %21, %22 : vector<8x8xi32>
    %cst_8 = arith.constant 0.000000e+00 : f32
    %24 = vector.broadcast %cst_8 : f32 to vector<8x8xf32>
    %25 = arith.select %23, %24, %9 : vector<8x8xi1>, vector<8x8xf32>
    %cst_9 = arith.constant 0.000000e+00 : f32
    %26 = vector.broadcast %cst_9 : f32 to vector<8x8xf32>
    %27 = arith.select %23, %26, %15 : vector<8x8xi1>, vector<8x8xf32>
    %c0_i32 = arith.constant 0 : i32
    %28 = arith.cmpi eq, %arg0, %c0_i32 : i32
    %29 = arith.extui %28 : i1 to i32
    %c0_i32_10 = arith.constant 0 : i32
    %30 = arith.cmpi ne, %29, %c0_i32_10 : i32
    scf.if %30 {
      %cst_18 = arith.constant 0.000000e+00 : f32
      %43 = vector.broadcast %cst_18 : f32 to vector<1x1xf32>
      %c0_19 = arith.constant 0 : index
      %c0_20 = arith.constant 0 : index
      %44 = vector.load %arg5[%c0_19, %c0_20] : memref<1x1xf32, #tpu.memory_space<vmem>>, vector<1x1xf32>
      tpu.vector_store %arg5[%c0_19, %c0_20], %43 {strides = array<i32>} : memref<1x1xf32, #tpu.memory_space<vmem>>, vector<1x1xf32>,
    } else {
    }
    %c0_11 = arith.constant 0 : index
    %c0_12 = arith.constant 0 : index
    %31 = vector.load %arg5[%c0_11, %c0_12] : memref<1x1xf32, #tpu.memory_space<vmem>>, vector<1x1xf32>
    %32 = arith.addf %25, %27 : vector<8x8xf32>
    %33 = vector.shape_cast %32 : vector<8x8xf32> to vector<1x8x8xf32>
    %cst_13 = arith.constant dense<0.000000e+00> : vector<1xf32>
    %34 = vector.multi_reduction <add>, %33, %cst_13 [1, 2] : vector<1x8x8xf32> to vector<1xf32>
    %35 = vector.shape_cast %34 : vector<1xf32> to vector<1x1x1xf32>
    %36 = vector.extract %35[0, 0, 0] : f32 from vector<1x1x1xf32>
    %37 = vector.broadcast %36 : f32 to vector<1x1xf32>
    %38 = arith.addf %31, %37 : vector<1x1xf32>
    %c0_14 = arith.constant 0 : index
    %c0_15 = arith.constant 0 : index
    %39 = vector.load %arg5[%c0_14, %c0_15] : memref<1x1xf32, #tpu.memory_space<vmem>>, vector<1x1xf32>
    tpu.vector_store %arg5[%c0_14, %c0_15], %38 {strides = array<i32>} : memref<1x1xf32, #tpu.memory_space<vmem>>, vector<1x1xf32>,
    %c0_i32_16 = arith.constant 0 : i32
    %40 = arith.cmpi eq, %arg0, %c0_i32_16 : i32
    %41 = arith.extui %40 : i1 to i32
    %c0_i32_17 = arith.constant 0 : i32
    %42 = arith.cmpi ne, %41, %c0_i32_17 : i32
    scf.if %42 {
      %c0_18 = arith.constant 0 : index
      %c0_19 = arith.constant 0 : index
      %43 = vector.load %arg5[%c0_18, %c0_19] : memref<1x1xf32, #tpu.memory_space<vmem>>, vector<1x1xf32>
      %cst_20 = arith.constant 1.250000e-01 : f32
      %44 = vector.broadcast %cst_20 : f32 to vector<1x1xf32>
      %45 = arith.mulf %43, %44 : vector<1x1xf32>
      %c0_21 = arith.constant 0 : index
      %c0_22 = arith.constant 0 : index
      %46 = vector.load %arg5[%c0_21, %c0_22] : memref<1x1xf32, #tpu.memory_space<vmem>>, vector<1x1xf32>
      tpu.vector_store %arg5[%c0_21, %c0_22], %45 {strides = array<i32>} : memref<1x1xf32, #tpu.memory_space<vmem>>, vector<1x1xf32>,
    } else {
    }
    return
  }
  func.func @transform_0(%arg0: i32) -> (i32, i32) {
    %c0_i32 = arith.constant 0 : i32
    %c0_i32_0 = arith.constant 0 : i32
    %c0_i32_1 = arith.constant 0 : i32
    return %c0_i32, %c0_i32_0 : i32, i32
  }
  func.func @transform_1(%arg0: i32) -> (i32, i32) {
    %c0_i32 = arith.constant 0 : i32
    %c0_i32_0 = arith.constant 0 : i32
    return %arg0, %c0_i32 : i32, i32
  }
  func.func @transform_2(%arg0: i32) -> (i32, i32) {
    %c0_i32 = arith.constant 0 : i32
    %c0_i32_0 = arith.constant 0 : i32
    return %arg0, %c0_i32 : i32, i32
  }
  func.func @transform_3(%arg0: i32) -> (i32, i32) {
    %c0_i32 = arith.constant 0 : i32
    %c0_i32_0 = arith.constant 0 : i32
    %c0_i32_1 = arith.constant 0 : i32
    return %c0_i32, %c0_i32_0 : i32, i32
  }
  func.func @transform_4(%arg0: i32) -> (i32, i32) {
    %c0_i32 = arith.constant 0 : i32
    %c0_i32_0 = arith.constant 0 : i32
    %c0_i32_1 = arith.constant 0 : i32
    return %c0_i32, %c0_i32_0 : i32, i32
  }
}

</mosaic_0001>

<bundles_post_ra>
// kernel: contrastive_loss.1
= control target key start
LH: loop header
LB: loop body
LE: loop exit
PB: predicated region body
PF: predicated region fallthrough
CT: control target
= control target key end

     0   :  { %v125_v1 = vmov 0   ;;  %s171_s0 = inlined_call_operand.<no memory space> [shape: f32[1,1], index: 0, kind: input, shape index: {}]   ;;  %s172_s1 = inlined_call_operand.vmem [shape: f32[8,8], index: 1, kind: input, shape index: {}]   ;;  %s173_s2 = inlined_call_operand.vmem [shape: f32[8,1], index: 2, kind: input, shape index: {}]   ;;  %s174_s3 = inlined_call_operand.vmem [shape: f32[1,8], index: 3, kind: input, shape index: {}]   ;;  %s175_s4 = inlined_call_operand.hbm [shape: f32[1,1], index: 4, kind: output, shape index: {}]  }
   0x1   :  { %v20_v0 = vld [vmem:[%s173_s2] sm:$0xff]  ;;  %97 = vset.pattern.permute.xlu0 %v125_v1 }
   0x2   :  { %10 = vsyncpa [#allocation4], 0  ;;  %27 = vperm.xlu0 %97, %v20_v0   ;;  %v23_v2 = vstv %s171_s0  ;;  %v19_v3 = vld [vmem:[%s172_s1] sm:$0xff]  ;;  %v38_v6 = vlaneseq  ;;  %vm55_vm1 = vcmask 64512   ;;  %vm51_vm2 = vcmask 0   ;;  %s127_s1 = smov [#allocation3]  }
   0x3   :  { %v98_v4 = vld [vmem:[%s174_s3] ss:$0 sm:$0xff]  ;;  %v24_v5 = vadd.f32 %v23_v2, %v19_v3  ;;  %v126_v18 = vmov 0.0   ;;  %s81_s2 = sshll.u32 %s127_s1, 4  ;;  %s83_s24 = sshll.u32 %s175_s4, 4  ;;  %s82_s2 = int_to_ptr.vmem [resolvable:$true] %s81_s2  ;;  %s84_s24 = int_to_ptr.hbm [resolvable:$true] %s83_s24 }
   0x4   :  { %v39_v8 = vshrl.u32 %v38_v6, 7  ;;  %v43_v9 = vand.u32 127, %v38_v6  ;;  %52 = vst.msk [vmem:[#allocation3] sm:$0x1] %vm51_vm2, %v126_v18 }
   0x5   :  { %v35_v7 = vsub.f32 %v24_v5, %v98_v4 }
   0x6   :  { %vm44_vm0 = vcmp.eq.s32.totalorder %v39_v8, %v43_v9 }
   0x7   :  { %v36_v10 = vmax.f32 %v35_v7, 0.0 }
   0x9   :  { %v46_v14 = vsel %vm44_vm0, 0.0, %v36_v10 }
   0xb   :  { %v53_v26 = vld [vmem:[#allocation3] sm:$0x1] }
  0x74   :  { %v28_v11 = vpop.permute.xlu0 %27 }
  0x75   :  { %v30_v12 = vsub.f32 %v24_v5, %v28_v11 }
  0x77   :  { %v31_v13 = vmax.f32 %v30_v12, 0.0 }
  0x79   :  { %v45_v15 = vsel %vm44_vm0, 0.0, %v31_v13 }
  0x7a   :  { %v54_v16 = vadd.f32 %v46_v14, %v45_v15 }
  0x7c   :  { %v56_v17 = vsel %vm55_vm1, %v54_v16, 0.0 }
  0x7d   :  { %57 = vadd.xlane.f32.xlu0 %v56_v17 }
  0xf0   :  { %v58_v19 = vpop.xlane.xlu0 %57 }
  0xf1   :  { %v59_v20 = vrot.slane %v58_v19, 4 }
  0xf3   :  { %v60_v21 = vadd.f32 %v59_v20, %v58_v19 }
  0xf5   :  { %v61_v22 = vrot.slane %v60_v21, 2 }
  0xf7   :  { %v62_v23 = vadd.f32 %v61_v22, %v60_v21 }
  0xf9   :  { %v63_v24 = vrot.slane %v62_v23, 1 }
  0xfb   :  { %v64_v25 = vadd.f32 %v63_v24, %v62_v23 }
  0xfd   :  { %92 = vpush %v64_v25 }
 0x12e   :  { %s93_s0 = spop %92 }
 0x12f   :  { %v66_v27 = vstv %s93_s0 }
 0x130   :  { %v67_v28 = vadd.f32 %v66_v27, %v53_v26 }
 0x132   :  { %69 = vst.msk [vmem:[#allocation3] sm:$0x1] %vm51_vm2, %v67_v28 }
 0x139   :  { %v73_v29 = vld [vmem:[#allocation3] sm:$0x1] }
 0x13a   :  { %v74_v30 = vmul.f32 0.125, %v73_v29 }
 0x13c   :  { %75 = vst.msk [vmem:[#allocation3] sm:$0x1] %vm51_vm2, %v74_v30 }
 0x13d   :  { %86 = dma.vmem_to_hbm [thread:$0]  %s82_s2, 16, %s84_s24, [#allocation4]  }
 0x13e   :  { %123 = dma.done.wait [#allocation4], 16  }
 0x13f   :  { %124 = vsyncadd [#allocation4], 4294967280 }
 0x140   :  { %91 = vsyncpa [#allocation4], 1 }

</bundles_post_ra>
